<compile_context>
chip_gen: v7x
topology: tpu7x:2x2x1
jax: 0.10.0
libtpu: 0.0.40
codegen_flags: <defaults>
</compile_context>

<pallas_src>
import functools

import jax
import jax.numpy as jnp
from jax import lax
from jax.experimental import pallas as pl
from jax.experimental.pallas import tpu as pltpu


def _round_up(a: int, b: int) -> int:
    return (a + b - 1) // b * b


def lora_linear_kernel(*refs, lora_only: bool):
    if lora_only:
        x_ref, a_ref, b_ref, bias_ref, o_ref = refs
        w_ref = None
    else:
        x_ref, w_ref, a_ref, b_ref, bias_ref, o_ref = refs

    x = x_ref[...]                                    # (tm, in_dim), native dtype

    # LoRA low-rank path: contract in_dim directly (no .T materialized).
    #   t = x @ A.T        -> (tm, rank)
    t = lax.dot_general(x, a_ref[...],
                        (((1,), (1,)), ((), ())),
                        preferred_element_type=jnp.float32)
    t = t.astype(b_ref.dtype)
    #   acc = t @ (scale*B).T -> (tm, tn), f32 accumulation on the MXU.
    acc = lax.dot_general(t, b_ref[...],
                          (((1,), (1,)), ((), ())),
                          preferred_element_type=jnp.float32)

    if not lora_only:
        # Base projection: x @ W.T with W consumed in its native (tn, in_dim)
        # layout (contract the in_dim axes), f32 accumulation.
        acc = acc + lax.dot_general(x, w_ref[...],
                                    (((1,), (1,)), ((), ())),
                                    preferred_element_type=jnp.float32)

    acc = acc + bias_ref[...].astype(jnp.float32)     # (1, tn) broadcasts over rows
    o_ref[...] = acc.astype(o_ref.dtype)


def lora_linear(x, weight, lora_A, lora_B, bias, *, scale=1.0,
                lora_only=False, tm=128, tn=128):
    """x: (..., in_dim) -> (..., out_dim)."""
    assert tm % 8 == 0, "row tile must be a multiple of 8 sublanes"
    assert tn % 128 == 0, "output-feature tile must be a multiple of 128 lanes"

    in_dim = x.shape[-1]
    rank = lora_A.shape[0]
    out_dim = lora_B.shape[0]
    lead = x.shape[:-1]

    x2 = x.reshape(-1, in_dim)
    M = x2.shape[0]

    # Tile sizes: shrink for tiny inputs so we don't pad 16 rows up to 128.
    tm_eff = min(tm, _round_up(M, 8))
    tn_eff = tn
    M_pad = _round_up(M, tm_eff)
    out_pad = _round_up(out_dim, tn_eff)

    # Pad rows / output features with zeros; sliced off after the call.
    if M_pad != M:
        x2 = jnp.pad(x2, ((0, M_pad - M), (0, 0)))

    # Fold `scale` into lora_B once (wrapper-side), keep params in their dtype.
    b_scaled = (lora_B.astype(jnp.float32) * scale).astype(lora_B.dtype)
    if out_pad != out_dim:
        b_scaled = jnp.pad(b_scaled, ((0, out_pad - out_dim), (0, 0)))

    if bias is None:
        bias2 = jnp.zeros((1, out_pad), dtype=x.dtype)
    else:
        bias2 = jnp.pad(bias, (0, out_pad - out_dim)).reshape(1, out_pad)

    inputs = [x2]
    in_specs = [pl.BlockSpec((tm_eff, in_dim), lambda i, j: (i, 0))]     # x rows

    if not lora_only:
        assert weight is not None, "weight required when lora_only=False"
        w = weight
        if out_pad != out_dim:
            w = jnp.pad(w, ((0, out_pad - out_dim), (0, 0)))
        inputs.append(w)
        in_specs.append(pl.BlockSpec((tn_eff, in_dim), lambda i, j: (j, 0)))

    inputs += [lora_A, b_scaled, bias2]
    in_specs += [
        pl.BlockSpec((rank, in_dim), lambda i, j: (0, 0)),               # lora_A
        pl.BlockSpec((tn_eff, rank), lambda i, j: (j, 0)),               # scale*lora_B
        pl.BlockSpec((1, tn_eff), lambda i, j: (0, j)),                  # bias
    ]

    kernel = functools.partial(lora_linear_kernel, lora_only=lora_only)

    out = pl.pallas_call(
        kernel,
        out_shape=jax.ShapeDtypeStruct((M_pad, out_pad), x.dtype),
        grid=(M_pad // tm_eff, out_pad // tn_eff),
        in_specs=in_specs,
        out_specs=pl.BlockSpec((tm_eff, tn_eff), lambda i, j: (i, j)),
        compiler_params=pltpu.CompilerParams(
            dimension_semantics=("parallel", "parallel")),
        # TODO(synk): for very large in_dim add a K ("arbitrary") grid axis with
        # an f32 VMEM accumulator and set vmem_limit_bytes for the larger tiles.
    )(*inputs)

    out = out[:M, :out_dim]
    return out.reshape(*lead, out_dim)


def init_params(key, in_dim, out_dim, rank=4, lora_only=False, bias=True):
    """Deterministic synthetic init mirroring the PyTorch __init__ shapes."""
    k_w, k_a, k_b = jax.random.split(key, 3)
    if not lora_only:
        # kaiming_uniform_(a=sqrt(5)) -> uniform(-bound, bound), bound = sqrt(1/fan_in)
        bound = (1.0 / in_dim) ** 0.5
        weight = jax.random.uniform(k_w, (out_dim, in_dim), jnp.float32,
                                    minval=-bound, maxval=bound)
    else:
        weight = None
    lora_A = jax.random.normal(k_a, (rank, in_dim), jnp.float32) * 0.01
    lora_B = jax.random.normal(k_b, (out_dim, rank), jnp.float32) * 0.01
    b = jnp.zeros((out_dim,), jnp.float32) if bias else None
    return weight, lora_A, lora_B, b


if __name__ == "__main__":
    key = jax.random.PRNGKey(0)
    batch, seq, in_dim, out_dim, rank = 2, 8, 32, 32, 4
    scale = 2.0

    k_x, k_p = jax.random.split(key)
    x = jax.random.normal(k_x, (batch, seq, in_dim), jnp.float32)
    weight, lora_A, lora_B, bias = init_params(k_p, in_dim, out_dim, rank)

    # Full path: base weight + scaled LoRA delta + bias.
    out = lora_linear(x, weight, lora_A, lora_B, bias,
                      scale=scale, lora_only=False)
    out = jax.block_until_ready(out)

    w_eff = lora_B @ lora_A * scale + weight
    ref = x @ w_eff.T + bias
    assert out.shape == (batch, seq, out_dim)
    assert jnp.allclose(out, ref, atol=1e-4, rtol=1e-4), "mismatch vs reference (full)"

    # lora_only path: no base weight, no bias.
    out2 = lora_linear(x, None, lora_A, lora_B, None,
                       scale=scale, lora_only=True)
    out2 = jax.block_until_ready(out2)
    ref2 = x @ (lora_B @ lora_A * scale).T
    assert jnp.allclose(out2, ref2, atol=1e-5, rtol=1e-4), "mismatch vs reference (lora_only)"

    print("KERNEL_OK")
</pallas_src>

<mosaic_0001>
module attributes {stable_mosaic.version = 11 : i64} {
  func.func @lora_linear_kernel(%arg0: i32, %arg1: i32, %arg2: memref<16x32xf32, #tpu.memory_space<vmem>>, %arg3: memref<128x32xf32, #tpu.memory_space<vmem>>, %arg4: memref<4x32xf32, #tpu.memory_space<vmem>>, %arg5: memref<128x4xf32, #tpu.memory_space<vmem>>, %arg6: memref<1x128xf32, #tpu.memory_space<vmem>>, %arg7: memref<16x128xf32, #tpu.memory_space<vmem>>) attributes {dimension_semantics = [#tpu.dimension_semantics<parallel>, #tpu.dimension_semantics<parallel>], iteration_bounds = array<i64: 1, 1>, scalar_prefetch = 0 : i64, scratch_operands = 0 : i64, tpu.core_type = #tpu.core_type<tc>, window_params = [{transform_indices = @transform_0, window_bounds = array<i64: 16, 32>}, {transform_indices = @transform_1, window_bounds = array<i64: 128, 32>}, {pipeline_mode = #tpu.pipeline_mode<synchronous>, transform_indices = @transform_2, window_bounds = array<i64: 4, 32>}, {transform_indices = @transform_3, window_bounds = array<i64: 128, 4>}, {transform_indices = @transform_4, window_bounds = array<i64: 1, 128>}, {transform_indices = @transform_5, window_bounds = array<i64: 16, 128>}]} {
    %c0 = arith.constant 0 : index
    %c0_0 = arith.constant 0 : index
    %0 = vector.load %arg2[%c0, %c0_0] : memref<16x32xf32, #tpu.memory_space<vmem>>, vector<16x32xf32>
    %c0_1 = arith.constant 0 : index
    %c0_2 = arith.constant 0 : index
    %1 = vector.load %arg4[%c0_1, %c0_2] : memref<4x32xf32, #tpu.memory_space<vmem>>, vector<4x32xf32>
    %cst = arith.constant dense<0.000000e+00> : vector<16x4xf32>
    %2 = tpu.matmul %0, %1, %cst {dimension_numbers = #tpu.dot_dimension_numbers<[1], [1], [0], [0], [0, 0, 1, 0], [], []>} : vector<16x32xf32>, vector<4x32xf32>, vector<16x4xf32> -> vector<16x4xf32>
    %c0_3 = arith.constant 0 : index
    %c0_4 = arith.constant 0 : index
    %3 = vector.load %arg5[%c0_3, %c0_4] : memref<128x4xf32, #tpu.memory_space<vmem>>, vector<128x4xf32>
    %cst_5 = arith.constant dense<0.000000e+00> : vector<16x128xf32>
    %4 = tpu.matmul %2, %3, %cst_5 {dimension_numbers = #tpu.dot_dimension_numbers<[1], [1], [0], [0], [0, 0, 1, 0], [], []>} : vector<16x4xf32>, vector<128x4xf32>, vector<16x128xf32> -> vector<16x128xf32>
    %c0_6 = arith.constant 0 : index
    %c0_7 = arith.constant 0 : index
    %5 = vector.load %arg3[%c0_6, %c0_7] : memref<128x32xf32, #tpu.memory_space<vmem>>, vector<128x32xf32>
    %cst_8 = arith.constant dense<0.000000e+00> : vector<16x128xf32>
    %6 = tpu.matmul %0, %5, %cst_8 {dimension_numbers = #tpu.dot_dimension_numbers<[1], [1], [0], [0], [0, 0, 1, 0], [], []>} : vector<16x32xf32>, vector<128x32xf32>, vector<16x128xf32> -> vector<16x128xf32>
    %7 = arith.addf %4, %6 : vector<16x128xf32>
    %c0_9 = arith.constant 0 : index
    %c0_10 = arith.constant 0 : index
    %8 = vector.load %arg6[%c0_9, %c0_10] : memref<1x128xf32, #tpu.memory_space<vmem>>, vector<1x128xf32>
    %9 = vector.broadcast %8 : vector<1x128xf32> to vector<16x128xf32>
    %10 = arith.addf %7, %9 : vector<16x128xf32>
    %c0_11 = arith.constant 0 : index
    %c0_12 = arith.constant 0 : index
    %11 = vector.load %arg7[%c0_11, %c0_12] : memref<16x128xf32, #tpu.memory_space<vmem>>, vector<16x128xf32>
    tpu.vector_store %arg7[%c0_11, %c0_12], %10 {strides = array<i32>} : memref<16x128xf32, #tpu.memory_space<vmem>>, vector<16x128xf32>,
    return
  }
  func.func @transform_0(%arg0: i32, %arg1: i32) -> (i32, i32) {
    %c0_i32 = arith.constant 0 : i32
    %c0_i32_0 = arith.constant 0 : i32
    return %arg0, %c0_i32 : i32, i32
  }
  func.func @transform_1(%arg0: i32, %arg1: i32) -> (i32, i32) {
    %c0_i32 = arith.constant 0 : i32
    %c0_i32_0 = arith.constant 0 : i32
    return %arg1, %c0_i32 : i32, i32
  }
  func.func @transform_2(%arg0: i32, %arg1: i32) -> (i32, i32) {
    %c0_i32 = arith.constant 0 : i32
    %c0_i32_0 = arith.constant 0 : i32
    %c0_i32_1 = arith.constant 0 : i32
    return %c0_i32, %c0_i32_0 : i32, i32
  }
  func.func @transform_3(%arg0: i32, %arg1: i32) -> (i32, i32) {
    %c0_i32 = arith.constant 0 : i32
    %c0_i32_0 = arith.constant 0 : i32
    return %arg1, %c0_i32 : i32, i32
  }
  func.func @transform_4(%arg0: i32, %arg1: i32) -> (i32, i32) {
    %c0_i32 = arith.constant 0 : i32
    %c0_i32_0 = arith.constant 0 : i32
    return %c0_i32, %arg1 : i32, i32
  }
  func.func @transform_5(%arg0: i32, %arg1: i32) -> (i32, i32) {
    %c0_i32 = arith.constant 0 : i32
    return %arg0, %arg1 : i32, i32
  }
}

</mosaic_0001>

<bundles_post_ra>
// kernel: tpu_custom_call.1
= control target key start
LH: loop header
LB: loop body
LE: loop exit
PB: predicated region body
PF: predicated region fallthrough
CT: control target
= control target key end

     0   :  { %vm24_vm0 = vcmask 261120   ;;  %vm264_vm1 = vcmask 31744   ;;  %s941_s0 = inlined_call_operand.vmem [shape: f32[16,32], index: 0, kind: input, shape index: {}]   ;;  %s942_s1 = inlined_call_operand.vmem [shape: f32[128,32], index: 1, kind: input, shape index: {}]   ;;  %s943_s2 = inlined_call_operand.vmem [shape: f32[4,32], index: 2, kind: input, shape index: {}]   ;;  %s944_s3 = inlined_call_operand.vmem [shape: f32[128,4], index: 3, kind: input, shape index: {}]   ;;  %s945_s4 = inlined_call_operand.vmem [shape: f32[1,128], index: 4, kind: input, shape index: {}]   ;;  %s946_s5 = inlined_call_operand.hbm [shape: f32[16,128], index: 5, kind: output, shape index: {}]  }
   0x1   :  { %v23_v0 = vld [vmem:[%s943_s2] sm:$0xf]  ;;  %v742_v2 = vld [vmem:[%s941_s0 + $0x8] sm:$0xff]  ;;  %vm747_vm2 = vmpackc.low %vm24_vm0, %vm24_vm0 }
   0x2   :  { %v21_v1 = vld [vmem:[%s941_s0] sm:$0xff]  ;;  %500 = vmatprep.subr.msk.mxu0 %vm24_vm0, %v23_v0  ;;  %v126_v5 = vld [vmem:[%s942_s1 + $0x8] sm:$0xff]  ;;  %vm767_vm3 = vmpackc.low %vm264_vm1, %vm264_vm1 }
   0x3   :  { %502 = vmatprep.mubr.msk.f32.mxu0 %vm24_vm0, %v21_v1  ;;  %v125_v4 = vld [vmem:[%s942_s1] sm:$0xff]  ;;  %501 = vmatpush3.xpose.msk.msra.mxu0 %vm24_vm0, %v23_v0  ;;  %v110_v8 = vld [vmem:[%s944_s3 + $0x8] sm:$0xff]  ;;  %v127_v11 = vld [vmem:[%s942_s1 + $0x10] sm:$0xff] }
   0x4   :  { %v575_v6 = vpack.c.bf16 %v126_v5, %v125_v4  ;;  %v109_v7 = vld [vmem:[%s944_s3] sm:$0xff]  ;;  %v128_v12 = vld [vmem:[%s942_s1 + $0x18] sm:$0xff]  ;;  %v111_v13 = vld [vmem:[%s944_s3 + $0x10] sm:$0xff] }
   0x5   :  { %v623_v10 = vpack.c.bf16 %v110_v8, %v109_v7  ;;  %v581_v14 = vpack.c.bf16 %v128_v12, %v127_v11  ;;  %v112_v15 = vld [vmem:[%s944_s3 + $0x18] sm:$0xff]  ;;  %v129_v17 = vld [vmem:[%s942_s1 + $0x20] sm:$0xff]  ;;  %v130_v18 = vld [vmem:[%s942_s1 + $0x28] sm:$0xff] }
   0x6   :  { %577 = vmatprep.subr.msk.bf16.mxu0 %vm747_vm2, %v575_v6  ;;  %503 = vmatmul.mubr.msk.f32.vlgmr.msra.gmra.mrb[0].mxu0 %vm24_vm0, %v742_v2  ;;  %v629_v16 = vpack.c.bf16 %v112_v15, %v111_v13  ;;  %v113_v19 = vld [vmem:[%s944_s3 + $0x20] sm:$0xff]  ;;  %v114_v20 = vld [vmem:[%s944_s3 + $0x28] sm:$0xff]  ;;  %v587_v21 = vpack.c.bf16 %v130_v18, %v129_v17 }
   0x7   :  { %625 = vmatprep.subr.msk.bf16.mxu1 %vm767_vm3, %v623_v10  ;;  %580 = vmatpush3.bf16.xpose.msk.msra.mxu0 %vm747_vm2, %v575_v6  ;;  %v635_v22 = vpack.c.bf16 %v114_v20, %v113_v19 }
   0x8   :  { %628 = vmatpush3.bf16.xpose.msk.msra.mxu1 %vm767_vm3, %v623_v10  ;;  %583 = vmatprep.subr.msk.bf16.mxu0 %vm747_vm2, %v581_v14 }
   0x9   :  { %631 = vmatprep.subr.msk.bf16.mxu1 %vm767_vm3, %v629_v16  ;;  %537 = vmatprep.mubr.msk.f32.mxu0 %vm24_vm0, %v21_v1 }
   0xa   :  { %10 = vsyncpa [#allocation3], 0  ;;  %v131_v23 = vld [vmem:[%s942_s1 + $0x30] sm:$0xff]  ;;  %v132_v24 = vld [vmem:[%s942_s1 + $0x38] sm:$0xff]  ;;  %s700_s7 = smov [#allocation2]  }
   0xb   :  { %v115_v25 = vld [vmem:[%s944_s3 + $0x30] sm:$0xff]  ;;  %v116_v26 = vld [vmem:[%s944_s3 + $0x38] sm:$0xff]  ;;  %v593_v27 = vpack.c.bf16 %v132_v24, %v131_v23  ;;  %v133_v29 = vld [vmem:[%s942_s1 + $0x40] sm:$0xff]  ;;  %s410_s8 = sshll.u32 %s700_s7, 4  ;;  %s411_s8 = int_to_ptr.vmem [resolvable:$true] %s410_s8 }
   0xc   :  { %v641_v28 = vpack.c.bf16 %v116_v26, %v115_v25  ;;  %v134_v30 = vld [vmem:[%s942_s1 + $0x48] sm:$0xff]  ;;  %v117_v31 = vld [vmem:[%s944_s3 + $0x40] sm:$0xff]  ;;  %v135_v35 = vld [vmem:[%s942_s1 + $0x50] sm:$0xff]  ;;  %s676_s9 = scalar_lea.vmem %s411_s8, 256  ;;  %p681_p1 = scmp.lt.s32.totalorder %s411_s8, %s411_s8 }
   0xd   :  { %v118_v32 = vld [vmem:[%s944_s3 + $0x48] sm:$0xff]  ;;  %v599_v33 = vpack.c.bf16 %v134_v30, %v133_v29  ;;  %v136_v36 = vld [vmem:[%s942_s1 + $0x58] sm:$0xff]  ;;  %v119_v37 = vld [vmem:[%s944_s3 + $0x50] sm:$0xff]  ;;  %p677_p0 = scmp.ne.s32.totalorder %s411_s8, %s676_s9  ;;  %p682_p2 = scmp.lt.s32.totalorder %s676_s9, %s676_s9 }
   0xe   :  { %v647_v34 = vpack.c.bf16 %v118_v32, %v117_v31  ;;  %v120_v38 = vld [vmem:[%s944_s3 + $0x58] sm:$0xff]  ;;  %v605_v39 = vpack.c.bf16 %v136_v36, %v135_v35  ;;  %v137_v41 = vld [vmem:[%s942_s1 + $0x60] sm:$0xff]  ;;  %v138_v42 = vld [vmem:[%s942_s1 + $0x68] sm:$0xff] }
   0xf   :  { %586 = vmatpush3.bf16.xpose.msk.msra.mxu0 %vm747_vm2, %v581_v14  ;;  %v653_v40 = vpack.c.bf16 %v120_v38, %v119_v37  ;;  %v121_v43 = vld [vmem:[%s944_s3 + $0x60] sm:$0xff]  ;;  %v122_v44 = vld [vmem:[%s944_s3 + $0x68] sm:$0xff]  ;;  %v611_v45 = vpack.c.bf16 %v138_v42, %v137_v41  ;;  %v139_v47 = vld [vmem:[%s942_s1 + $0x70] sm:$0xff]  ;;  %p683_p3 = por %p682_p2, %p681_p1 }
  0x10   :  { %634 = vmatpush3.bf16.xpose.msk.msra.mxu1 %vm767_vm3, %v629_v16  ;;  %589 = vmatprep.subr.msk.bf16.mxu0 %vm747_vm2, %v587_v21  ;;  %v659_v46 = vpack.c.bf16 %v122_v44, %v121_v43  ;;  %v140_v48 = vld [vmem:[%s942_s1 + $0x78] sm:$0xff]  ;;  %v123_v49 = vld [vmem:[%s944_s3 + $0x70] sm:$0xff]  ;;  %v460_v58 = vld [vmem:[%s945_s4] ss:$0 sm:$0xff] }
  0x11   :  { %637 = vmatprep.subr.msk.bf16.mxu1 %vm767_vm3, %v635_v22  ;;  %v124_v50 = vld [vmem:[%s944_s3 + $0x78] sm:$0xff]  ;;  %v617_v51 = vpack.c.bf16 %v140_v48, %v139_v47  ;;  %p684_p4 = pnand %p683_p3, %p677_p0 }
  0x12   :  { %v665_v52 = vpack.c.bf16 %v124_v50, %v123_v49 }
  0x17   :  { %592 = vmatpush3.bf16.xpose.msk.msra.mxu0 %vm747_vm2, %v587_v21 }
  0x18   :  { %640 = vmatpush3.bf16.xpose.msk.msra.mxu1 %vm767_vm3, %v635_v22  ;;  %595 = vmatprep.subr.msk.bf16.mxu0 %vm747_vm2, %v593_v27 }
  0x19   :  { %643 = vmatprep.subr.msk.bf16.mxu1 %vm767_vm3, %v641_v28 }
  0x1f   :  { %598 = vmatpush3.bf16.xpose.msk.msra.mxu0 %vm747_vm2, %v593_v27 }
  0x20   :  { %646 = vmatpush3.bf16.xpose.msk.msra.mxu1 %vm767_vm3, %v641_v28  ;;  %601 = vmatprep.subr.msk.bf16.mxu0 %vm747_vm2, %v599_v33 }
  0x21   :  { %649 = vmatprep.subr.msk.bf16.mxu1 %vm767_vm3, %v647_v34 }
  0x27   :  { %604 = vmatpush3.bf16.xpose.msk.msra.mxu0 %vm747_vm2, %v599_v33 }
  0x28   :  { %652 = vmatpush3.bf16.xpose.msk.msra.mxu1 %vm767_vm3, %v647_v34  ;;  %607 = vmatprep.subr.msk.bf16.mxu0 %vm747_vm2, %v605_v39 }
  0x29   :  { %655 = vmatprep.subr.msk.bf16.mxu1 %vm767_vm3, %v653_v40 }
  0x2f   :  { %610 = vmatpush3.bf16.xpose.msk.msra.mxu0 %vm747_vm2, %v605_v39 }
  0x30   :  { %658 = vmatpush3.bf16.xpose.msk.msra.mxu1 %vm767_vm3, %v653_v40  ;;  %613 = vmatprep.subr.msk.bf16.mxu0 %vm747_vm2, %v611_v45 }
  0x31   :  { %661 = vmatprep.subr.msk.bf16.mxu1 %vm767_vm3, %v659_v46 }
  0x37   :  { %616 = vmatpush3.bf16.xpose.msk.msra.mxu0 %vm747_vm2, %v611_v45 }
  0x38   :  { %664 = vmatpush3.bf16.xpose.msk.msra.mxu1 %vm767_vm3, %v659_v46  ;;  %619 = vmatprep.subr.msk.bf16.mxu0 %vm747_vm2, %v617_v51 }
  0x39   :  { %667 = vmatprep.subr.msk.bf16.mxu1 %vm767_vm3, %v665_v52 }
  0x3f   :  { %622 = vmatpush3.bf16.xpose.msk.msra.mxu0 %vm747_vm2, %v617_v51 }
  0x40   :  { %670 = vmatpush3.bf16.xpose.msk.msra.mxu1 %vm767_vm3, %v665_v52 }
  0x46   :  { %538 = vmatmul.mubr.msk.f32.vlgmr.msra.gmra.mrb[2].mxu0 %vm24_vm0, %v742_v2 }
  0xd9   :  { %v504_v53 = vpop.f32.mrb[0].mxu0 }
  0xda   :  { %v100_v54 = vpop.f32.mrb[1].mxu0 }
  0xdb   :  { %572 = vmatprep.mubr.msk.f32.mxu1 %vm264_vm1, %v100_v54 }
  0xdc   :  { %573 = vmatmul.mubr.msk.f32.vlgmr.msra.gmra.mrb[0].mxu1 %vm264_vm1, %v504_v53 }
 0x119   :  { %v539_v55 = vpop.f32.mrb[2].mxu0 }
 0x11a   :  { %v255_v56 = vpop.f32.mrb[3].mxu0 }
 0x1af   :  { %v574_v57 = vpop.f32.mrb[0].mxu1 }
 0x1b0   :  { %v391_v59 = vadd.f32 %v574_v57, %v539_v55  ;;  %v385_v60 = vpop.f32.mrb[1].mxu1 }
 0x1b1   :  { %v386_v61 = vadd.f32 %v385_v60, %v255_v56 }
 0x1b2   :  { %v402_v62 = vadd.f32 %v460_v58, %v391_v59 }
 0x1b3   :  { %v401_v63 = vadd.f32 %v460_v58, %v386_v61 }
 0x1b4   :  { %404 = vst [vmem:[#allocation2 + $0x8] sm:$0xff] %v402_v62 }
 0x1b5   :  { %403 = vst [vmem:[#allocation2] sm:$0xff] %v401_v63 }
 0x1b6   :  { %687 = shalt.err (!%p684_p4)
}
 0x1b7   :  { %s688_s4 = scalar_lea.hbm %s946_s5, 256 }
 0x1b8   :  { %p689_p5 = scmp.ne.s32.totalorder %s946_s5, %s688_s4  ;;  %p692_p6 = scmp.lt.u32.totalorder %s688_s4, %s946_s5 }
 0x1ba   :  { %p694_p7 = pnand %p692_p6, %p689_p5 }
 0x1bc   :  { %697 = shalt.err (!%p694_p7)
}
 0x1bd   :  { %s701_s16 = smov 128   ;;  %s702_s17 = smov 8  }
 0x1be   :  { %416 = dma.vmem_to_hbm [thread:$0]  %s411_s8, 256, %s946_s5, [#allocation3], %s701_s16, %s701_s16, %s702_s17  }
 0x1bf   :  { %698 = dma.done.wait [#allocation3], 256  }
 0x1c0   :  { %699 = vsyncadd [#allocation3], 4294967040 }
 0x1c1   :  { %420 = vsyncpa [#allocation3], 1 }

</bundles_post_ra>
